<compile_context>
chip_gen: v7x
topology: tpu7x:2x2x1
jax: 0.10.0
libtpu: 0.0.40
codegen_flags: <defaults>
</compile_context>

<pallas_src>
import functools

import jax
import jax.numpy as jnp
from jax.experimental import pallas as pl
from jax.experimental.pallas import tpu as pltpu


_ROWS = 8     # rows handled per grid step (fills 8 sublanes; 8 DMAs in flight)
_LANE = 128


def _round_up(x, m):
    return ((x + m - 1) // m) * m


# ------------------------------ read (gather) --------------------------------

def _read_kernel(idx_ref, cache_hbm, out_ref, sem):
    """Gather _ROWS cache rows per grid step via concurrent HBM->VMEM DMAs."""
    base = pl.program_id(0) * _ROWS
    copies = []
    # Issue all row DMAs first so they are all in flight, then wait.
    for r in range(_ROWS):
        row = idx_ref[base + r]
        cp = pltpu.make_async_copy(
            cache_hbm.at[pl.ds(row, 1)],      # (1, W) source row in HBM
            out_ref.at[pl.ds(r, 1)],          # (1, W) row of the VMEM out tile
            sem.at[r])
        cp.start()
        copies.append(cp)
    for cp in copies:
        cp.wait()


def _cache_read(cache, idx, *, entry_size, e_pad):
    """cache: (n_entries, 2*e_pad) int32 fused buffer -> (idx_rows, value_rows)."""
    _, w = cache.shape
    b = idx.shape[0]
    b_pad = _round_up(max(b, 1), _ROWS)
    idx_i32 = idx.astype(jnp.int32)
    if b_pad != b:
        # Pad with a valid row (0); the extra gathered rows are discarded.
        idx_i32 = jnp.concatenate(
            [idx_i32, jnp.zeros((b_pad - b,), jnp.int32)], axis=0)

    fused = pl.pallas_call(
        _read_kernel,
        out_shape=jax.ShapeDtypeStruct((b_pad, w), jnp.int32),
        grid_spec=pltpu.PrefetchScalarGridSpec(
            num_scalar_prefetch=1,
            grid=(b_pad // _ROWS,),
            in_specs=[pl.BlockSpec(memory_space=pl.ANY)],   # whole cache in HBM
            out_specs=pl.BlockSpec((_ROWS, w), lambda g, idx_ref: (g, 0)),
            scratch_shapes=[pltpu.SemaphoreType.DMA((_ROWS,))],
        ),
        compiler_params=pltpu.CompilerParams(
            dimension_semantics=("parallel",)),  # independent rows; v7x megacore
    )(idx_i32, cache)

    idx_rows = fused[:b, :entry_size]
    val_rows = jax.lax.bitcast_convert_type(
        fused[:b, e_pad:e_pad + entry_size], jnp.float32)
    return idx_rows, val_rows


# ------------------------------ write (scatter) -------------------------------

def _write_kernel(idx_ref, new_hbm, cache_in_hbm, cache_out_hbm, sem):
    """Scatter _ROWS new rows per grid step via direct HBM->HBM row DMAs."""
    del cache_in_hbm   # aliased to cache_out_hbm; untouched rows persist
    base = pl.program_id(0) * _ROWS
    copies = []
    for r in range(_ROWS):
        dst = idx_ref[base + r]
        cp = pltpu.make_async_copy(
            new_hbm.at[pl.ds(base + r, 1)],    # (1, W) new row in HBM
            cache_out_hbm.at[pl.ds(dst, 1)],   # (1, W) destination cache row
            sem.at[r])
        cp.start()
        copies.append(cp)
    for cp in copies:
        cp.wait()


def _cache_write(cache, idx, new_idx_sparse, new_value_sparse):
    """Returns the updated fused cache with rows `idx` overwritten."""
    n_entries, w = cache.shape
    e_pad = w // 2
    b, entry_size = new_idx_sparse.shape

    # Fuse the int / value rows into a single int32 row (bitcast is free).
    i32 = new_idx_sparse.astype(jnp.int32)
    v32 = jax.lax.bitcast_convert_type(
        new_value_sparse.astype(jnp.float32), jnp.int32)
    if e_pad != entry_size:
        padw = [(0, 0), (0, e_pad - entry_size)]
        i32 = jnp.pad(i32, padw)
        v32 = jnp.pad(v32, padw)
    new_fused = jnp.concatenate([i32, v32], axis=1)         # (b, 2*e_pad)

    # Pad batch to a multiple of _ROWS by repeating the last (idx, row) pair:
    # duplicate writes of identical bytes to the same row are idempotent.
    b_pad = _round_up(max(b, 1), _ROWS)
    idx_i32 = idx.astype(jnp.int32)
    if b_pad != b:
        reps = b_pad - b
        idx_i32 = jnp.concatenate(
            [idx_i32, jnp.broadcast_to(idx_i32[-1:], (reps,))], axis=0)
        new_fused = jnp.concatenate(
            [new_fused, jnp.broadcast_to(new_fused[-1:], (reps, w))], axis=0)

    updated = pl.pallas_call(
        _write_kernel,
        out_shape=jax.ShapeDtypeStruct((n_entries, w), jnp.int32),
        grid_spec=pltpu.PrefetchScalarGridSpec(
            num_scalar_prefetch=1,
            grid=(b_pad // _ROWS,),
            in_specs=[
                pl.BlockSpec(memory_space=pl.ANY),   # new fused rows (HBM)
                pl.BlockSpec(memory_space=pl.ANY),   # old cache (HBM, aliased)
            ],
            out_specs=pl.BlockSpec(memory_space=pl.ANY),
            scratch_shapes=[pltpu.SemaphoreType.DMA((_ROWS,))],
        ),
        # inputs: 0=idx (scalar prefetch), 1=new_fused, 2=cache -> output 0
        input_output_aliases={2: 0},
        compiler_params=pltpu.CompilerParams(
            dimension_semantics=("arbitrary",)),     # keep cross-step ordering
    )(idx_i32, new_fused, cache)
    return updated


# Module-level jit with donation so the aliased cache update is truly in place.
_cache_write_jit = jax.jit(_cache_write, donate_argnums=(0,))


# ------------------------------ module wrapper --------------------------------

class Cache:
    """JAX/Pallas port of the PyTorch Cache module (fused int32 storage)."""

    def __init__(self, n_entries, entry_size):
        self.n_entries = n_entries
        self.entry_size = entry_size
        self.e_pad = _round_up(entry_size, _LANE)
        # zeros == torch.zeros for both halves (0.0f bitcasts to 0x00000000).
        self.cache = jnp.zeros((n_entries, 2 * self.e_pad), dtype=jnp.int32)
        self._read = jax.jit(functools.partial(
            _cache_read, entry_size=entry_size, e_pad=self.e_pad))

    @property
    def idx_sparse(self):
        return self.cache[:, :self.entry_size]

    @property
    def value_sparse(self):
        return jax.lax.bitcast_convert_type(
            self.cache[:, self.e_pad:self.e_pad + self.entry_size], jnp.float32)

    def forward(self):
        return None   # matches the PyTorch forward(), which returns nothing

    def __call__(self):
        return self.forward()

    def read(self, idx):
        return self._read(self.cache, idx)

    def write(self, idx, idx_sparse, value_sparse):
        self.cache = _cache_write_jit(self.cache, idx, idx_sparse, value_sparse)
        return None


# ------------------------------------ demo ------------------------------------

if __name__ == "__main__":
    n_entries, entry_size = 32, 128
    b_write, b_read = 4, 8

    key = jax.random.PRNGKey(0)
    k1, k2, k3, k4 = jax.random.split(key, 4)

    cache = Cache(n_entries, entry_size)
    _ = cache()   # forward() is a no-op

    # deterministic example inputs (unique write indices)
    write_idx = jax.random.permutation(k1, n_entries)[:b_write].astype(jnp.int32)
    new_idx_sparse = jax.random.randint(
        k2, (b_write, entry_size), 0, 100, dtype=jnp.int32)
    new_value_sparse = jax.random.normal(k3, (b_write, entry_size), jnp.float32)
    read_idx = jax.random.randint(k4, (b_read,), 0, n_entries, dtype=jnp.int32)

    # write then read through the Pallas kernels
    cache.write(write_idx, new_idx_sparse, new_value_sparse)
    got_i, got_v = cache.read(read_idx)
    cur_i, cur_v = cache.idx_sparse, cache.value_sparse
    jax.block_until_ready((cur_i, cur_v, got_i, got_v))

    # pure-JAX reference
    ref_i_cache = jnp.zeros((n_entries, entry_size), jnp.int32).at[write_idx].set(new_idx_sparse)
    ref_v_cache = jnp.zeros((n_entries, entry_size), jnp.float32).at[write_idx].set(new_value_sparse)

    assert jnp.array_equal(cur_i, ref_i_cache)
    assert jnp.allclose(cur_v, ref_v_cache)
    assert jnp.array_equal(got_i, ref_i_cache[read_idx])
    assert jnp.allclose(got_v, ref_v_cache[read_idx])

    print("KERNEL_OK")
</pallas_src>

<mosaic_0001>
module attributes {stable_mosaic.version = 11 : i64} {
  func.func @_write_kernel(%arg0: i32, %arg1: memref<8xi32, #tpu.memory_space<smem>>, %arg2: memref<8x256xi32, #tpu.memory_space<any>>, %arg3: memref<32x256xi32, #tpu.memory_space<any>>, %arg4: memref<32x256xi32, #tpu.memory_space<any>>, %arg5: memref<8x!tpu.dma_semaphore, #tpu.memory_space<semaphore_mem>>) attributes {dimension_semantics = [#tpu.dimension_semantics<arbitrary>], iteration_bounds = array<i64: 1>, scalar_prefetch = 1 : i64, scratch_operands = 1 : i64, tpu.core_type = #tpu.core_type<tc>, window_params = [{}, {}, {}]} {
    %c8_i32 = arith.constant 8 : i32
    %0 = arith.muli %arg0, %c8_i32 : i32
    %c0_i32 = arith.constant 0 : i32
    %1 = arith.addi %0, %c0_i32 : i32
    %2 = arith.index_cast %1 : i32 to index
    %3 = memref.load %arg1[%2] : memref<8xi32, #tpu.memory_space<smem>>
    %c0_i32_0 = arith.constant 0 : i32
    %4 = arith.addi %0, %c0_i32_0 : i32
    %c0_i32_1 = arith.constant 0 : i32
    %c0_i32_2 = arith.constant 0 : i32
    %5 = tpu.memref_slice %arg2[%4, %c0_i32_2] : memref<8x256xi32, #tpu.memory_space<any>> -> memref<1x256xi32, #tpu.memory_space<any>>
    %c0_i32_3 = arith.constant 0 : i32
    %6 = tpu.memref_slice %arg4[%3, %c0_i32_3] : memref<32x256xi32, #tpu.memory_space<any>> -> memref<1x256xi32, #tpu.memory_space<any>>
    %7 = tpu.memref_slice %arg5[%c0_i32_1] : memref<8x!tpu.dma_semaphore, #tpu.memory_space<semaphore_mem>> -> memref<1x!tpu.dma_semaphore, #tpu.memory_space<semaphore_mem>>
    %8 = tpu.memref_squeeze %7 : memref<1x!tpu.dma_semaphore, #tpu.memory_space<semaphore_mem>> -> memref<!tpu.dma_semaphore, #tpu.memory_space<semaphore_mem>>
    tpu.enqueue_dma source(%5 : memref<1x256xi32, #tpu.memory_space<any>>) target(%6 : memref<1x256xi32, #tpu.memory_space<any>>) target_semaphore(%8 : memref<!tpu.dma_semaphore, #tpu.memory_space<semaphore_mem>>)
    %c1_i32 = arith.constant 1 : i32
    %9 = arith.addi %0, %c1_i32 : i32
    %10 = arith.index_cast %9 : i32 to index
    %11 = memref.load %arg1[%10] : memref<8xi32, #tpu.memory_space<smem>>
    %c1_i32_4 = arith.constant 1 : i32
    %12 = arith.addi %0, %c1_i32_4 : i32
    %c1_i32_5 = arith.constant 1 : i32
    %c0_i32_6 = arith.constant 0 : i32
    %13 = tpu.memref_slice %arg2[%12, %c0_i32_6] : memref<8x256xi32, #tpu.memory_space<any>> -> memref<1x256xi32, #tpu.memory_space<any>>
    %c0_i32_7 = arith.constant 0 : i32
    %14 = tpu.memref_slice %arg4[%11, %c0_i32_7] : memref<32x256xi32, #tpu.memory_space<any>> -> memref<1x256xi32, #tpu.memory_space<any>>
    %15 = tpu.memref_slice %arg5[%c1_i32_5] : memref<8x!tpu.dma_semaphore, #tpu.memory_space<semaphore_mem>> -> memref<1x!tpu.dma_semaphore, #tpu.memory_space<semaphore_mem>>
    %16 = tpu.memref_squeeze %15 : memref<1x!tpu.dma_semaphore, #tpu.memory_space<semaphore_mem>> -> memref<!tpu.dma_semaphore, #tpu.memory_space<semaphore_mem>>
    tpu.enqueue_dma source(%13 : memref<1x256xi32, #tpu.memory_space<any>>) target(%14 : memref<1x256xi32, #tpu.memory_space<any>>) target_semaphore(%16 : memref<!tpu.dma_semaphore, #tpu.memory_space<semaphore_mem>>)
    %c2_i32 = arith.constant 2 : i32
    %17 = arith.addi %0, %c2_i32 : i32
    %18 = arith.index_cast %17 : i32 to index
    %19 = memref.load %arg1[%18] : memref<8xi32, #tpu.memory_space<smem>>
    %c2_i32_8 = arith.constant 2 : i32
    %20 = arith.addi %0, %c2_i32_8 : i32
    %c2_i32_9 = arith.constant 2 : i32
    %c0_i32_10 = arith.constant 0 : i32
    %21 = tpu.memref_slice %arg2[%20, %c0_i32_10] : memref<8x256xi32, #tpu.memory_space<any>> -> memref<1x256xi32, #tpu.memory_space<any>>
    %c0_i32_11 = arith.constant 0 : i32
    %22 = tpu.memref_slice %arg4[%19, %c0_i32_11] : memref<32x256xi32, #tpu.memory_space<any>> -> memref<1x256xi32, #tpu.memory_space<any>>
    %23 = tpu.memref_slice %arg5[%c2_i32_9] : memref<8x!tpu.dma_semaphore, #tpu.memory_space<semaphore_mem>> -> memref<1x!tpu.dma_semaphore, #tpu.memory_space<semaphore_mem>>
    %24 = tpu.memref_squeeze %23 : memref<1x!tpu.dma_semaphore, #tpu.memory_space<semaphore_mem>> -> memref<!tpu.dma_semaphore, #tpu.memory_space<semaphore_mem>>
    tpu.enqueue_dma source(%21 : memref<1x256xi32, #tpu.memory_space<any>>) target(%22 : memref<1x256xi32, #tpu.memory_space<any>>) target_semaphore(%24 : memref<!tpu.dma_semaphore, #tpu.memory_space<semaphore_mem>>)
    %c3_i32 = arith.constant 3 : i32
    %25 = arith.addi %0, %c3_i32 : i32
    %26 = arith.index_cast %25 : i32 to index
    %27 = memref.load %arg1[%26] : memref<8xi32, #tpu.memory_space<smem>>
    %c3_i32_12 = arith.constant 3 : i32
    %28 = arith.addi %0, %c3_i32_12 : i32
    %c3_i32_13 = arith.constant 3 : i32
    %c0_i32_14 = arith.constant 0 : i32
    %29 = tpu.memref_slice %arg2[%28, %c0_i32_14] : memref<8x256xi32, #tpu.memory_space<any>> -> memref<1x256xi32, #tpu.memory_space<any>>
    %c0_i32_15 = arith.constant 0 : i32
    %30 = tpu.memref_slice %arg4[%27, %c0_i32_15] : memref<32x256xi32, #tpu.memory_space<any>> -> memref<1x256xi32, #tpu.memory_space<any>>
    %31 = tpu.memref_slice %arg5[%c3_i32_13] : memref<8x!tpu.dma_semaphore, #tpu.memory_space<semaphore_mem>> -> memref<1x!tpu.dma_semaphore, #tpu.memory_space<semaphore_mem>>
    %32 = tpu.memref_squeeze %31 : memref<1x!tpu.dma_semaphore, #tpu.memory_space<semaphore_mem>> -> memref<!tpu.dma_semaphore, #tpu.memory_space<semaphore_mem>>
    tpu.enqueue_dma source(%29 : memref<1x256xi32, #tpu.memory_space<any>>) target(%30 : memref<1x256xi32, #tpu.memory_space<any>>) target_semaphore(%32 : memref<!tpu.dma_semaphore, #tpu.memory_space<semaphore_mem>>)
    %c4_i32 = arith.constant 4 : i32
    %33 = arith.addi %0, %c4_i32 : i32
    %34 = arith.index_cast %33 : i32 to index
    %35 = memref.load %arg1[%34] : memref<8xi32, #tpu.memory_space<smem>>
    %c4_i32_16 = arith.constant 4 : i32
    %36 = arith.addi %0, %c4_i32_16 : i32
    %c4_i32_17 = arith.constant 4 : i32
    %c0_i32_18 = arith.constant 0 : i32
    %37 = tpu.memref_slice %arg2[%36, %c0_i32_18] : memref<8x256xi32, #tpu.memory_space<any>> -> memref<1x256xi32, #tpu.memory_space<any>>
    %c0_i32_19 = arith.constant 0 : i32
    %38 = tpu.memref_slice %arg4[%35, %c0_i32_19] : memref<32x256xi32, #tpu.memory_space<any>> -> memref<1x256xi32, #tpu.memory_space<any>>
    %39 = tpu.memref_slice %arg5[%c4_i32_17] : memref<8x!tpu.dma_semaphore, #tpu.memory_space<semaphore_mem>> -> memref<1x!tpu.dma_semaphore, #tpu.memory_space<semaphore_mem>>
    %40 = tpu.memref_squeeze %39 : memref<1x!tpu.dma_semaphore, #tpu.memory_space<semaphore_mem>> -> memref<!tpu.dma_semaphore, #tpu.memory_space<semaphore_mem>>
    tpu.enqueue_dma source(%37 : memref<1x256xi32, #tpu.memory_space<any>>) target(%38 : memref<1x256xi32, #tpu.memory_space<any>>) target_semaphore(%40 : memref<!tpu.dma_semaphore, #tpu.memory_space<semaphore_mem>>)
    %c5_i32 = arith.constant 5 : i32
    %41 = arith.addi %0, %c5_i32 : i32
    %42 = arith.index_cast %41 : i32 to index
    %43 = memref.load %arg1[%42] : memref<8xi32, #tpu.memory_space<smem>>
    %c5_i32_20 = arith.constant 5 : i32
    %44 = arith.addi %0, %c5_i32_20 : i32
    %c5_i32_21 = arith.constant 5 : i32
    %c0_i32_22 = arith.constant 0 : i32
    %45 = tpu.memref_slice %arg2[%44, %c0_i32_22] : memref<8x256xi32, #tpu.memory_space<any>> -> memref<1x256xi32, #tpu.memory_space<any>>
    %c0_i32_23 = arith.constant 0 : i32
    %46 = tpu.memref_slice %arg4[%43, %c0_i32_23] : memref<32x256xi32, #tpu.memory_space<any>> -> memref<1x256xi32, #tpu.memory_space<any>>
    %47 = tpu.memref_slice %arg5[%c5_i32_21] : memref<8x!tpu.dma_semaphore, #tpu.memory_space<semaphore_mem>> -> memref<1x!tpu.dma_semaphore, #tpu.memory_space<semaphore_mem>>
    %48 = tpu.memref_squeeze %47 : memref<1x!tpu.dma_semaphore, #tpu.memory_space<semaphore_mem>> -> memref<!tpu.dma_semaphore, #tpu.memory_space<semaphore_mem>>
    tpu.enqueue_dma source(%45 : memref<1x256xi32, #tpu.memory_space<any>>) target(%46 : memref<1x256xi32, #tpu.memory_space<any>>) target_semaphore(%48 : memref<!tpu.dma_semaphore, #tpu.memory_space<semaphore_mem>>)
    %c6_i32 = arith.constant 6 : i32
    %49 = arith.addi %0, %c6_i32 : i32
    %50 = arith.index_cast %49 : i32 to index
    %51 = memref.load %arg1[%50] : memref<8xi32, #tpu.memory_space<smem>>
    %c6_i32_24 = arith.constant 6 : i32
    %52 = arith.addi %0, %c6_i32_24 : i32
    %c6_i32_25 = arith.constant 6 : i32
    %c0_i32_26 = arith.constant 0 : i32
    %53 = tpu.memref_slice %arg2[%52, %c0_i32_26] : memref<8x256xi32, #tpu.memory_space<any>> -> memref<1x256xi32, #tpu.memory_space<any>>
    %c0_i32_27 = arith.constant 0 : i32
    %54 = tpu.memref_slice %arg4[%51, %c0_i32_27] : memref<32x256xi32, #tpu.memory_space<any>> -> memref<1x256xi32, #tpu.memory_space<any>>
    %55 = tpu.memref_slice %arg5[%c6_i32_25] : memref<8x!tpu.dma_semaphore, #tpu.memory_space<semaphore_mem>> -> memref<1x!tpu.dma_semaphore, #tpu.memory_space<semaphore_mem>>
    %56 = tpu.memref_squeeze %55 : memref<1x!tpu.dma_semaphore, #tpu.memory_space<semaphore_mem>> -> memref<!tpu.dma_semaphore, #tpu.memory_space<semaphore_mem>>
    tpu.enqueue_dma source(%53 : memref<1x256xi32, #tpu.memory_space<any>>) target(%54 : memref<1x256xi32, #tpu.memory_space<any>>) target_semaphore(%56 : memref<!tpu.dma_semaphore, #tpu.memory_space<semaphore_mem>>)
    %c7_i32 = arith.constant 7 : i32
    %57 = arith.addi %0, %c7_i32 : i32
    %58 = arith.index_cast %57 : i32 to index
    %59 = memref.load %arg1[%58] : memref<8xi32, #tpu.memory_space<smem>>
    %c7_i32_28 = arith.constant 7 : i32
    %60 = arith.addi %0, %c7_i32_28 : i32
    %c7_i32_29 = arith.constant 7 : i32
    %c0_i32_30 = arith.constant 0 : i32
    %61 = tpu.memref_slice %arg2[%60, %c0_i32_30] : memref<8x256xi32, #tpu.memory_space<any>> -> memref<1x256xi32, #tpu.memory_space<any>>
    %c0_i32_31 = arith.constant 0 : i32
    %62 = tpu.memref_slice %arg4[%59, %c0_i32_31] : memref<32x256xi32, #tpu.memory_space<any>> -> memref<1x256xi32, #tpu.memory_space<any>>
    %63 = tpu.memref_slice %arg5[%c7_i32_29] : memref<8x!tpu.dma_semaphore, #tpu.memory_space<semaphore_mem>> -> memref<1x!tpu.dma_semaphore, #tpu.memory_space<semaphore_mem>>
    %64 = tpu.memref_squeeze %63 : memref<1x!tpu.dma_semaphore, #tpu.memory_space<semaphore_mem>> -> memref<!tpu.dma_semaphore, #tpu.memory_space<semaphore_mem>>
    tpu.enqueue_dma source(%61 : memref<1x256xi32, #tpu.memory_space<any>>) target(%62 : memref<1x256xi32, #tpu.memory_space<any>>) target_semaphore(%64 : memref<!tpu.dma_semaphore, #tpu.memory_space<semaphore_mem>>)
    %c0_i32_32 = arith.constant 0 : i32
    %c0_i32_33 = arith.constant 0 : i32
    %65 = tpu.memref_slice %arg2[%4, %c0_i32_33] : memref<8x256xi32, #tpu.memory_space<any>> -> memref<1x256xi32, #tpu.memory_space<any>>
    %c0_i32_34 = arith.constant 0 : i32
    %66 = tpu.memref_slice %arg4[%3, %c0_i32_34] : memref<32x256xi32, #tpu.memory_space<any>> -> memref<1x256xi32, #tpu.memory_space<any>>
    %67 = tpu.memref_slice %arg5[%c0_i32_32] : memref<8x!tpu.dma_semaphore, #tpu.memory_space<semaphore_mem>> -> memref<1x!tpu.dma_semaphore, #tpu.memory_space<semaphore_mem>>
    %68 = tpu.memref_squeeze %67 : memref<1x!tpu.dma_semaphore, #tpu.memory_space<semaphore_mem>> -> memref<!tpu.dma_semaphore, #tpu.memory_space<semaphore_mem>>
    tpu.wait_dma2 semaphore(%68 : memref<!tpu.dma_semaphore, #tpu.memory_space<semaphore_mem>>) src(%65 : memref<1x256xi32, #tpu.memory_space<any>>) dst(%66 : memref<1x256xi32, #tpu.memory_space<any>>)
    %c1_i32_35 = arith.constant 1 : i32
    %c0_i32_36 = arith.constant 0 : i32
    %69 = tpu.memref_slice %arg2[%12, %c0_i32_36] : memref<8x256xi32, #tpu.memory_space<any>> -> memref<1x256xi32, #tpu.memory_space<any>>
    %c0_i32_37 = arith.constant 0 : i32
    %70 = tpu.memref_slice %arg4[%11, %c0_i32_37] : memref<32x256xi32, #tpu.memory_space<any>> -> memref<1x256xi32, #tpu.memory_space<any>>
    %71 = tpu.memref_slice %arg5[%c1_i32_35] : memref<8x!tpu.dma_semaphore, #tpu.memory_space<semaphore_mem>> -> memref<1x!tpu.dma_semaphore, #tpu.memory_space<semaphore_mem>>
    %72 = tpu.memref_squeeze %71 : memref<1x!tpu.dma_semaphore, #tpu.memory_space<semaphore_mem>> -> memref<!tpu.dma_semaphore, #tpu.memory_space<semaphore_mem>>
    tpu.wait_dma2 semaphore(%72 : memref<!tpu.dma_semaphore, #tpu.memory_space<semaphore_mem>>) src(%69 : memref<1x256xi32, #tpu.memory_space<any>>) dst(%70 : memref<1x256xi32, #tpu.memory_space<any>>)
    %c2_i32_38 = arith.constant 2 : i32
    %c0_i32_39 = arith.constant 0 : i32
    %73 = tpu.memref_slice %arg2[%20, %c0_i32_39] : memref<8x256xi32, #tpu.memory_space<any>> -> memref<1x256xi32, #tpu.memory_space<any>>
    %c0_i32_40 = arith.constant 0 : i32
    %74 = tpu.memref_slice %arg4[%19, %c0_i32_40] : memref<32x256xi32, #tpu.memory_space<any>> -> memref<1x256xi32, #tpu.memory_space<any>>
    %75 = tpu.memref_slice %arg5[%c2_i32_38] : memref<8x!tpu.dma_semaphore, #tpu.memory_space<semaphore_mem>> -> memref<1x!tpu.dma_semaphore, #tpu.memory_space<semaphore_mem>>
    %76 = tpu.memref_squeeze %75 : memref<1x!tpu.dma_semaphore, #tpu.memory_space<semaphore_mem>> -> memref<!tpu.dma_semaphore, #tpu.memory_space<semaphore_mem>>
    tpu.wait_dma2 semaphore(%76 : memref<!tpu.dma_semaphore, #tpu.memory_space<semaphore_mem>>) src(%73 : memref<1x256xi32, #tpu.memory_space<any>>) dst(%74 : memref<1x256xi32, #tpu.memory_space<any>>)
    %c3_i32_41 = arith.constant 3 : i32
    %c0_i32_42 = arith.constant 0 : i32
    %77 = tpu.memref_slice %arg2[%28, %c0_i32_42] : memref<8x256xi32, #tpu.memory_space<any>> -> memref<1x256xi32, #tpu.memory_space<any>>
    %c0_i32_43 = arith.constant 0 : i32
    %78 = tpu.memref_slice %arg4[%27, %c0_i32_43] : memref<32x256xi32, #tpu.memory_space<any>> -> memref<1x256xi32, #tpu.memory_space<any>>
    %79 = tpu.memref_slice %arg5[%c3_i32_41] : memref<8x!tpu.dma_semaphore, #tpu.memory_space<semaphore_mem>> -> memref<1x!tpu.dma_semaphore, #tpu.memory_space<semaphore_mem>>
    %80 = tpu.memref_squeeze %79 : memref<1x!tpu.dma_semaphore, #tpu.memory_space<semaphore_mem>> -> memref<!tpu.dma_semaphore, #tpu.memory_space<semaphore_mem>>
    tpu.wait_dma2 semaphore(%80 : memref<!tpu.dma_semaphore, #tpu.memory_space<semaphore_mem>>) src(%77 : memref<1x256xi32, #tpu.memory_space<any>>) dst(%78 : memref<1x256xi32, #tpu.memory_space<any>>)
    %c4_i32_44 = arith.constant 4 : i32
    %c0_i32_45 = arith.constant 0 : i32
    %81 = tpu.memref_slice %arg2[%36, %c0_i32_45] : memref<8x256xi32, #tpu.memory_space<any>> -> memref<1x256xi32, #tpu.memory_space<any>>
    %c0_i32_46 = arith.constant 0 : i32
    %82 = tpu.memref_slice %arg4[%35, %c0_i32_46] : memref<32x256xi32, #tpu.memory_space<any>> -> memref<1x256xi32, #tpu.memory_space<any>>
    %83 = tpu.memref_slice %arg5[%c4_i32_44] : memref<8x!tpu.dma_semaphore, #tpu.memory_space<semaphore_mem>> -> memref<1x!tpu.dma_semaphore, #tpu.memory_space<semaphore_mem>>
    %84 = tpu.memref_squeeze %83 : memref<1x!tpu.dma_semaphore, #tpu.memory_space<semaphore_mem>> -> memref<!tpu.dma_semaphore, #tpu.memory_space<semaphore_mem>>
    tpu.wait_dma2 semaphore(%84 : memref<!tpu.dma_semaphore, #tpu.memory_space<semaphore_mem>>) src(%81 : memref<1x256xi32, #tpu.memory_space<any>>) dst(%82 : memref<1x256xi32, #tpu.memory_space<any>>)
    %c5_i32_47 = arith.constant 5 : i32
    %c0_i32_48 = arith.constant 0 : i32
    %85 = tpu.memref_slice %arg2[%44, %c0_i32_48] : memref<8x256xi32, #tpu.memory_space<any>> -> memref<1x256xi32, #tpu.memory_space<any>>
    %c0_i32_49 = arith.constant 0 : i32
    %86 = tpu.memref_slice %arg4[%43, %c0_i32_49] : memref<32x256xi32, #tpu.memory_space<any>> -> memref<1x256xi32, #tpu.memory_space<any>>
    %87 = tpu.memref_slice %arg5[%c5_i32_47] : memref<8x!tpu.dma_semaphore, #tpu.memory_space<semaphore_mem>> -> memref<1x!tpu.dma_semaphore, #tpu.memory_space<semaphore_mem>>
    %88 = tpu.memref_squeeze %87 : memref<1x!tpu.dma_semaphore, #tpu.memory_space<semaphore_mem>> -> memref<!tpu.dma_semaphore, #tpu.memory_space<semaphore_mem>>
    tpu.wait_dma2 semaphore(%88 : memref<!tpu.dma_semaphore, #tpu.memory_space<semaphore_mem>>) src(%85 : memref<1x256xi32, #tpu.memory_space<any>>) dst(%86 : memref<1x256xi32, #tpu.memory_space<any>>)
    %c6_i32_50 = arith.constant 6 : i32
    %c0_i32_51 = arith.constant 0 : i32
    %89 = tpu.memref_slice %arg2[%52, %c0_i32_51] : memref<8x256xi32, #tpu.memory_space<any>> -> memref<1x256xi32, #tpu.memory_space<any>>
    %c0_i32_52 = arith.constant 0 : i32
    %90 = tpu.memref_slice %arg4[%51, %c0_i32_52] : memref<32x256xi32, #tpu.memory_space<any>> -> memref<1x256xi32, #tpu.memory_space<any>>
    %91 = tpu.memref_slice %arg5[%c6_i32_50] : memref<8x!tpu.dma_semaphore, #tpu.memory_space<semaphore_mem>> -> memref<1x!tpu.dma_semaphore, #tpu.memory_space<semaphore_mem>>
    %92 = tpu.memref_squeeze %91 : memref<1x!tpu.dma_semaphore, #tpu.memory_space<semaphore_mem>> -> memref<!tpu.dma_semaphore, #tpu.memory_space<semaphore_mem>>
    tpu.wait_dma2 semaphore(%92 : memref<!tpu.dma_semaphore, #tpu.memory_space<semaphore_mem>>) src(%89 : memref<1x256xi32, #tpu.memory_space<any>>) dst(%90 : memref<1x256xi32, #tpu.memory_space<any>>)
    %c7_i32_53 = arith.constant 7 : i32
    %c0_i32_54 = arith.constant 0 : i32
    %93 = tpu.memref_slice %arg2[%60, %c0_i32_54] : memref<8x256xi32, #tpu.memory_space<any>> -> memref<1x256xi32, #tpu.memory_space<any>>
    %c0_i32_55 = arith.constant 0 : i32
    %94 = tpu.memref_slice %arg4[%59, %c0_i32_55] : memref<32x256xi32, #tpu.memory_space<any>> -> memref<1x256xi32, #tpu.memory_space<any>>
    %95 = tpu.memref_slice %arg5[%c7_i32_53] : memref<8x!tpu.dma_semaphore, #tpu.memory_space<semaphore_mem>> -> memref<1x!tpu.dma_semaphore, #tpu.memory_space<semaphore_mem>>
    %96 = tpu.memref_squeeze %95 : memref<1x!tpu.dma_semaphore, #tpu.memory_space<semaphore_mem>> -> memref<!tpu.dma_semaphore, #tpu.memory_space<semaphore_mem>>
    tpu.wait_dma2 semaphore(%96 : memref<!tpu.dma_semaphore, #tpu.memory_space<semaphore_mem>>) src(%93 : memref<1x256xi32, #tpu.memory_space<any>>) dst(%94 : memref<1x256xi32, #tpu.memory_space<any>>)
    return
  }
}

</mosaic_0001>

<bundles_post_ra>
// kernel: _cache_write.1
= control target key start
LH: loop header
LB: loop body
LE: loop exit
PB: predicated region body
PF: predicated region fallthrough
CT: control target
= control target key end

     0   :  { %s767_s0 = inlined_call_operand.vmem [shape: s32[8], index: 0, kind: input, shape index: {}]   ;;  %s768_s1 = inlined_call_operand.vmem [shape: s32[8,256], index: 1, kind: input, shape index: {}]   ;;  %s769_s2 = inlined_call_operand.hbm [shape: s32[32,256], index: 2, kind: input, shape index: {}, may-alias: {2,3}]   ;;  %s770_s3 = inlined_call_operand.hbm [shape: s32[32,256], index: 3, kind: output, shape index: {}, may-alias: {2,3}]  }
   0x1   :  { %s8_s14 = sshll.u32 %s767_s0, 4  ;;  %s9_s14 = int_to_ptr.vmem [resolvable:$true] %s8_s14 }
   0x2   :  { %s327_s15 = scalar_lea.vmem %s9_s14, 16  ;;  %p332_p1 = scmp.lt.s32.totalorder %s9_s14, %s9_s14 }
   0x3   :  { %p328_p0 = scmp.ne.s32.totalorder %s9_s14, %s327_s15  ;;  %p333_p2 = scmp.lt.s32.totalorder %s327_s15, %s327_s15 }
   0x5   :  { %p334_p3 = por %p333_p2, %p332_p1 }
   0x7   :  { %p335_p4 = pnand %p334_p3, %p328_p0 }
   0x9   :  { %338 = shalt.err (!%p335_p4)  }
   0xa   :  { %s549_s16 = smov [#allocation4]  }
   0xb   :  { %11 = dma.vmem_to_smem %s9_s14, 16, %s549_s16, [#allocation3] }
   0xc   :  { %531 = dma.done.wait [#allocation3], 16 }
   0xd   :  { %532 = vsyncadd [#allocation3], 4294967280 }
   0xe   :  { %13 = sfence }
   0xf   :  { %s15_s2 = sld [smem:[#allocation4]]  ;;  %s28_s19 = sshll.u32 %s768_s1, 4  ;;  %s578_s19 = int_to_ptr.vmem [resolvable:$true] %s28_s19 }
  0x10   :  { %s580_s0 = sld [smem:[#allocation4 + $0x1]]  ;;  %s38_s22 = scalar_lea.vmem %s768_s1, 1 }
  0x11   :  { %s585_s23 = sld [smem:[#allocation4 + $0x2]]  ;;  %s47_s24 = sshll.u32 %s38_s22, 4  ;;  %s590_s24 = int_to_ptr.vmem [resolvable:$true] %s47_s24 }
  0x12   :  { %s57_s27 = scalar_lea.vmem %s768_s1, 2  ;;  %s339_s13 = scalar_lea.vmem %s578_s19, 32 }
  0x13   :  { %s66_s28 = sshll.u32 %s57_s27, 4  ;;  %p340_p5 = scmp.ne.s32.totalorder %s578_s19, %s339_s13  ;;  %s592_s28 = int_to_ptr.vmem [resolvable:$true] %s66_s28 }
  0x14   :  { %s602_s14 = scalar_lea.vmem %s578_s19, 256  ;;  %p344_p6 = scmp.lt.s32.totalorder %s578_s19, %s578_s19 }
  0x15   :  { %s21_s29 = sshrl.u32 %s15_s2, 3  ;;  %s22_s30 = sand.u32 7, %s15_s2  }
  0x16   :  { %s293_s4 = sshll.u32 %s21_s29, 4  ;;  %s39_s6 = sshrl.u32 %s580_s0, 3 }
  0x17   :  { %s24_s5 = sadd.s32 %s293_s4, %s22_s30  ;;  %s40_s8 = sand.u32 7, %s580_s0  }
  0x18   :  { %s294_s7 = sshll.u32 %s24_s5, 4  ;;  %s296_s12 = sshll.u32 %s39_s6, 4 }
  0x19   :  { %s26_s11 = scalar_lea.hbm %s770_s3, %s294_s7  ;;  %p345_p7 = scmp.lt.s32.totalorder %s602_s14, %s339_s13 }
  0x1b   :  { %p346_p8 = por %p345_p7, %p344_p6 }
  0x1d   :  { %p347_p9 = pnand %p346_p8, %p340_p5 }
  0x1f   :  { %350 = shalt.err (!%p347_p9)  }
  0x20   :  { %s351_s15 = scalar_lea.hbm %s26_s11, 32  ;;  %s610_s17 = scalar_lea.hbm %s770_s3, 1024 }
  0x21   :  { %p352_p10 = scmp.ne.s32.totalorder %s26_s11, %s351_s15  ;;  %p354_p11 = scmp.lt.u32.totalorder %s26_s11, %s770_s3 }
  0x22   :  { %p355_p12 = scmp.lt.u32.totalorder %s610_s17, %s351_s15  ;;  %p357_p0 = scmp.lt.u32.totalorder %s351_s15, %s26_s11 }
  0x24   :  { %p356_p13 = por %p355_p12, %p354_p11 }
  0x26   :  { %p358_p1 = por %p357_p0, %p356_p13 }
  0x28   :  { %p359_p2 = pnand %p358_p1, %p352_p10 }
  0x2a   :  { %362 = shalt.err (!%p359_p2)  }
  0x2b   :  { %s550_s20 = smov 128   ;;  %s551_s21 = smov 1  }
  0x2c   :  { %31 = dma.vmem_to_hbm [thread:$0]  %s578_s19, 32, %s26_s11, [#allocation2], %s550_s20, %s550_s20, %s551_s21 }
  0x2d   :  { %s42_s22 = sadd.s32 %s296_s12, %s40_s8  ;;  %s58_s25 = sshrl.u32 %s585_s23, 3 }
  0x2e   :  { %s297_s26 = sshll.u32 %s42_s22, 4  ;;  %s59_s27 = sand.u32 7, %s585_s23  }
  0x2f   :  { %s44_s4 = scalar_lea.hbm %s770_s3, %s297_s26  ;;  %s299_s5 = sshll.u32 %s58_s25, 4 }
  0x30   :  { %s363_s6 = scalar_lea.vmem %s590_s24, 32  ;;  %p368_p4 = scmp.lt.s32.totalorder %s590_s24, %s578_s19 }
  0x31   :  { %p364_p3 = scmp.ne.s32.totalorder %s590_s24, %s363_s6  ;;  %p369_p5 = scmp.lt.s32.totalorder %s602_s14, %s363_s6 }
  0x33   :  { %p370_p6 = por %p369_p5, %p368_p4 }
  0x35   :  { %p371_p7 = pnand %p370_p6, %p364_p3 }
  0x37   :  { %374 = shalt.err (!%p371_p7)  }
  0x38   :  { %s375_s7 = scalar_lea.hbm %s44_s4, 32  ;;  %p378_p9 = scmp.lt.u32.totalorder %s44_s4, %s770_s3 }
  0x39   :  { %p376_p8 = scmp.ne.s32.totalorder %s44_s4, %s375_s7  ;;  %p379_p10 = scmp.lt.u32.totalorder %s610_s17, %s375_s7 }
  0x3a   :  { %p381_p12 = scmp.lt.u32.totalorder %s375_s7, %s44_s4 }
  0x3b   :  { %p380_p11 = por %p379_p10, %p378_p9 }
  0x3d   :  { %p382_p13 = por %p381_p12, %p380_p11 }
  0x3f   :  { %p383_p0 = pnand %p382_p13, %p376_p8 }
  0x41   :  { %386 = shalt.err (!%p383_p0)  }
  0x42   :  { %50 = dma.vmem_to_hbm [thread:$0]  %s590_s24, 32, %s44_s4, [#allocation2 + $0x1], %s550_s20, %s550_s20, %s551_s21 }
  0x43   :  { %s61_s23 = sadd.s32 %s299_s5, %s59_s27  ;;  %s638_s10 = sld [smem:[#allocation4 + $0x3]] }
  0x44   :  { %s300_s11 = sshll.u32 %s61_s23, 4  ;;  %s76_s15 = scalar_lea.vmem %s768_s1, 3 }
  0x45   :  { %s63_s18 = scalar_lea.hbm %s770_s3, %s300_s11  ;;  %s85_s0 = sshll.u32 %s76_s15, 4  ;;  %s659_s0 = int_to_ptr.vmem [resolvable:$true] %s85_s0 }
  0x46   :  { %s387_s22 = scalar_lea.vmem %s592_s28, 32  ;;  %p392_p2 = scmp.lt.s32.totalorder %s592_s28, %s578_s19 }
  0x47   :  { %p388_p1 = scmp.ne.s32.totalorder %s592_s28, %s387_s22  ;;  %p393_p3 = scmp.lt.s32.totalorder %s602_s14, %s387_s22 }
  0x49   :  { %p394_p4 = por %p393_p3, %p392_p2 }
  0x4b   :  { %p395_p5 = pnand %p394_p4, %p388_p1 }
  0x4d   :  { %398 = shalt.err (!%p395_p5)  }
  0x4e   :  { %s399_s24 = scalar_lea.hbm %s63_s18, 32  ;;  %p402_p7 = scmp.lt.u32.totalorder %s63_s18, %s770_s3 }
  0x4f   :  { %p400_p6 = scmp.ne.s32.totalorder %s63_s18, %s399_s24  ;;  %p403_p8 = scmp.lt.u32.totalorder %s610_s17, %s399_s24 }
  0x50   :  { %p405_p10 = scmp.lt.u32.totalorder %s399_s24, %s63_s18 }
  0x51   :  { %p404_p9 = por %p403_p8, %p402_p7 }
  0x53   :  { %p406_p11 = por %p405_p10, %p404_p9 }
  0x55   :  { %p407_p12 = pnand %p406_p11, %p400_p6 }
  0x57   :  { %410 = shalt.err (!%p407_p12)  }
  0x58   :  { %69 = dma.vmem_to_hbm [thread:$0]  %s592_s28, 32, %s63_s18, [#allocation2 + $0x2], %s550_s20, %s550_s20, %s551_s21 }
  0x59   :  { %s661_s27 = sld [smem:[#allocation4 + $0x4]]  ;;  %s95_s4 = scalar_lea.vmem %s768_s1, 4 }
  0x5a   :  { %s666_s5 = sld [smem:[#allocation4 + $0x5]]  ;;  %s77_s6 = sshrl.u32 %s638_s10, 3 }
  0x5b   :  { %s78_s7 = sand.u32 7, %s638_s10   ;;  %s302_s9 = sshll.u32 %s77_s6, 4 }
  0x5c   :  { %s104_s28 = sshll.u32 %s95_s4, 4  ;;  %s80_s8 = sadd.s32 %s302_s9, %s78_s7  ;;  %s670_s28 = int_to_ptr.vmem [resolvable:$true] %s104_s28 }
  0x5d   :  { %s303_s23 = sshll.u32 %s80_s8, 4  ;;  %s114_s13 = scalar_lea.vmem %s768_s1, 5 }
  0x5e   :  { %s82_s2 = scalar_lea.hbm %s770_s3, %s303_s23  ;;  %s411_s22 = scalar_lea.vmem %s659_s0, 32 }
  0x5f   :  { %s96_s18 = sshrl.u32 %s661_s27, 3  ;;  %p412_p13 = scmp.ne.s32.totalorder %s659_s0, %s411_s22 }
  0x60   :  { %p416_p0 = scmp.lt.s32.totalorder %s659_s0, %s578_s19  ;;  %p417_p1 = scmp.lt.s32.totalorder %s602_s14, %s411_s22 }
  0x62   :  { %p418_p2 = por %p417_p1, %p416_p0 }
  0x64   :  { %p419_p3 = pnand %p418_p2, %p412_p13 }
  0x66   :  { %422 = shalt.err (!%p419_p3)  }
  0x67   :  { %s423_s10 = scalar_lea.hbm %s82_s2, 32  ;;  %p426_p5 = scmp.lt.u32.totalorder %s82_s2, %s770_s3 }
  0x68   :  { %p424_p4 = scmp.ne.s32.totalorder %s82_s2, %s423_s10  ;;  %p427_p6 = scmp.lt.u32.totalorder %s610_s17, %s423_s10 }
  0x69   :  { %p429_p8 = scmp.lt.u32.totalorder %s423_s10, %s82_s2 }
  0x6a   :  { %p428_p7 = por %p427_p6, %p426_p5 }
  0x6c   :  { %p430_p9 = por %p429_p8, %p428_p7 }
  0x6e   :  { %p431_p10 = pnand %p430_p9, %p424_p4 }
  0x70   :  { %434 = shalt.err (!%p431_p10)  }
  0x71   :  { %88 = dma.vmem_to_hbm [thread:$0]  %s659_s0, 32, %s82_s2, [#allocation2 + $0x3], %s550_s20, %s550_s20, %s551_s21 }
  0x72   :  { %s97_s26 = sand.u32 7, %s661_s27   ;;  %s305_s29 = sshll.u32 %s96_s18, 4 }
  0x73   :  { %s99_s30 = sadd.s32 %s305_s29, %s97_s26  ;;  %s115_s4 = sshrl.u32 %s666_s5, 3 }
  0x74   :  { %s306_s6 = sshll.u32 %s99_s30, 4  ;;  %s116_s7 = sand.u32 7, %s666_s5  }
  0x75   :  { %s101_s23 = scalar_lea.hbm %s770_s3, %s306_s6  ;;  %s308_s11 = sshll.u32 %s115_s4, 4 }
  0x76   :  { %s435_s12 = scalar_lea.vmem %s670_s28, 32  ;;  %p440_p12 = scmp.lt.s32.totalorder %s670_s28, %s578_s19 }
  0x77   :  { %p436_p11 = scmp.ne.s32.totalorder %s670_s28, %s435_s12  ;;  %p441_p13 = scmp.lt.s32.totalorder %s602_s14, %s435_s12 }
  0x79   :  { %p442_p0 = por %p441_p13, %p440_p12 }
  0x7b   :  { %p443_p1 = pnand %p442_p0, %p436_p11 }
  0x7d   :  { %446 = shalt.err (!%p443_p1)  }
  0x7e   :  { %s447_s15 = scalar_lea.hbm %s101_s23, 32  ;;  %p450_p3 = scmp.lt.u32.totalorder %s101_s23, %s770_s3 }
  0x7f   :  { %p448_p2 = scmp.ne.s32.totalorder %s101_s23, %s447_s15  ;;  %p451_p4 = scmp.lt.u32.totalorder %s610_s17, %s447_s15 }
  0x80   :  { %p453_p6 = scmp.lt.u32.totalorder %s447_s15, %s101_s23 }
  0x81   :  { %p452_p5 = por %p451_p4, %p450_p3 }
  0x83   :  { %p454_p7 = por %p453_p6, %p452_p5 }
  0x85   :  { %p455_p8 = pnand %p454_p7, %p448_p2 }
  0x87   :  { %458 = shalt.err (!%p455_p8)  }
  0x88   :  { %107 = dma.vmem_to_hbm [thread:$0]  %s670_s28, 32, %s101_s23, [#allocation2 + $0x4], %s550_s20, %s550_s20, %s551_s21 }
  0x89   :  { %s118_s5 = sadd.s32 %s308_s11, %s116_s7  ;;  %s123_s18 = sshll.u32 %s114_s13, 4  ;;  %s124_s18 = int_to_ptr.vmem [resolvable:$true] %s123_s18 }
  0x8a   :  { %s309_s22 = sshll.u32 %s118_s5, 4  ;;  %s310_s26 = sld [smem:[#allocation4 + $0x6]] }
  0x8b   :  { %s120_s25 = scalar_lea.hbm %s770_s3, %s309_s22  ;;  %s459_s29 = scalar_lea.vmem %s124_s18, 32 }
  0x8c   :  { %p460_p9 = scmp.ne.s32.totalorder %s124_s18, %s459_s29  ;;  %p464_p10 = scmp.lt.s32.totalorder %s124_s18, %s578_s19 }
  0x8d   :  { %p465_p11 = scmp.lt.s32.totalorder %s602_s14, %s459_s29 }
  0x8f   :  { %p466_p12 = por %p465_p11, %p464_p10 }
  0x91   :  { %p467_p13 = pnand %p466_p12, %p460_p9 }
  0x93   :  { %470 = shalt.err (!%p467_p13)  }
  0x94   :  { %s471_s28 = scalar_lea.hbm %s120_s25, 32  ;;  %p474_p1 = scmp.lt.u32.totalorder %s120_s25, %s770_s3 }
  0x95   :  { %p472_p0 = scmp.ne.s32.totalorder %s120_s25, %s471_s28  ;;  %p475_p2 = scmp.lt.u32.totalorder %s610_s17, %s471_s28 }
  0x96   :  { %p477_p4 = scmp.lt.u32.totalorder %s471_s28, %s120_s25 }
  0x97   :  { %p476_p3 = por %p475_p2, %p474_p1 }
  0x99   :  { %p478_p5 = por %p477_p4, %p476_p3 }
  0x9b   :  { %p479_p6 = pnand %p478_p5, %p472_p0 }
  0x9d   :  { %482 = shalt.err (!%p479_p6)  }
  0x9e   :  { %126 = dma.vmem_to_hbm [thread:$0]  %s124_s18, 32, %s120_s25, [#allocation2 + $0x5], %s550_s20, %s550_s20, %s551_s21 }
  0x9f   :  { %s133_s7 = scalar_lea.vmem %s768_s1, 6  ;;  %s730_s9 = sld [smem:[#allocation4 + $0x7]] }
  0xa0   :  { %s142_s8 = sshll.u32 %s133_s7, 4  ;;  %s152_s12 = scalar_lea.vmem %s768_s1, 7  ;;  %s735_s8 = int_to_ptr.vmem [resolvable:$true] %s142_s8 }
  0xa1   :  { %s134_s15 = sshrl.u32 %s310_s26, 3  ;;  %s135_s0 = sand.u32 7, %s310_s26  }
  0xa2   :  { %s311_s27 = sshll.u32 %s134_s15, 4  ;;  %s161_s5 = sshll.u32 %s152_s12, 4  ;;  %s162_s5 = int_to_ptr.vmem [resolvable:$true] %s161_s5 }
  0xa3   :  { %s137_s16 = sadd.s32 %s311_s27, %s135_s0  ;;  %s483_s28 = scalar_lea.vmem %s735_s8, 32 }
  0xa4   :  { %s312_s18 = sshll.u32 %s137_s16, 4  ;;  %p484_p7 = scmp.ne.s32.totalorder %s735_s8, %s483_s28 }
  0xa5   :  { %s153_s2 = sshrl.u32 %s730_s9, 3  ;;  %s154_s22 = sand.u32 7, %s730_s9  }
  0xa6   :  { %s139_s25 = scalar_lea.hbm %s770_s3, %s312_s18  ;;  %s314_s29 = sshll.u32 %s153_s2, 4 }
  0xa7   :  { %p488_p8 = scmp.lt.s32.totalorder %s735_s8, %s578_s19  ;;  %p489_p9 = scmp.lt.s32.totalorder %s602_s14, %s483_s28 }
  0xa9   :  { %p490_p10 = por %p489_p9, %p488_p8 }
  0xab   :  { %p491_p11 = pnand %p490_p10, %p484_p7 }
  0xad   :  { %494 = shalt.err (!%p491_p11)  }
  0xae   :  { %s495_s1 = scalar_lea.hbm %s139_s25, 32  ;;  %p498_p13 = scmp.lt.u32.totalorder %s139_s25, %s770_s3 }
  0xaf   :  { %p496_p12 = scmp.ne.s32.totalorder %s139_s25, %s495_s1  ;;  %p499_p0 = scmp.lt.u32.totalorder %s610_s17, %s495_s1 }
  0xb0   :  { %p501_p2 = scmp.lt.u32.totalorder %s495_s1, %s139_s25 }
  0xb1   :  { %p500_p1 = por %p499_p0, %p498_p13 }
  0xb3   :  { %p502_p3 = por %p501_p2, %p500_p1 }
  0xb5   :  { %p503_p4 = pnand %p502_p3, %p496_p12 }
  0xb7   :  { %506 = shalt.err (!%p503_p4)  }
  0xb8   :  { %145 = dma.vmem_to_hbm [thread:$0]  %s735_s8, 32, %s139_s25, [#allocation2 + $0x6], %s550_s20, %s550_s20, %s551_s21 }
  0xb9   :  { %s156_s4 = sadd.s32 %s314_s29, %s154_s22  ;;  %s507_s23 = scalar_lea.vmem %s162_s5, 32 }
  0xba   :  { %s315_s13 = sshll.u32 %s156_s4, 4  ;;  %p508_p5 = scmp.ne.s32.totalorder %s162_s5, %s507_s23 }
  0xbb   :  { %s158_s9 = scalar_lea.hbm %s770_s3, %s315_s13  ;;  %p512_p6 = scmp.lt.s32.totalorder %s162_s5, %s578_s19 }
  0xbc   :  { %p513_p7 = scmp.lt.s32.totalorder %s602_s14, %s507_s23 }
  0xbe   :  { %p514_p8 = por %p513_p7, %p512_p6 }
  0xc0   :  { %p515_p9 = pnand %p514_p8, %p508_p5 }
  0xc2   :  { %518 = shalt.err (!%p515_p9)  }
  0xc3   :  { %s519_s11 = scalar_lea.hbm %s158_s9, 32  ;;  %p522_p11 = scmp.lt.u32.totalorder %s158_s9, %s770_s3 }
  0xc4   :  { %p520_p10 = scmp.ne.s32.totalorder %s158_s9, %s519_s11  ;;  %p523_p12 = scmp.lt.u32.totalorder %s610_s17, %s519_s11 }
  0xc5   :  { %p525_p0 = scmp.lt.u32.totalorder %s519_s11, %s158_s9 }
  0xc6   :  { %p524_p13 = por %p523_p12, %p522_p11 }
  0xc8   :  { %p526_p1 = por %p525_p0, %p524_p13 }
  0xca   :  { %p527_p2 = pnand %p526_p1, %p520_p10 }
  0xcc   :  { %530 = shalt.err (!%p527_p2)  }
  0xcd   :  { %164 = dma.vmem_to_hbm [thread:$0]  %s162_s5, 32, %s158_s9, [#allocation2 + $0x7], %s550_s20, %s550_s20, %s551_s21 }
  0xce   :  { %533 = dma.done.wait [#allocation2], 32 }
  0xcf   :  { %534 = vsyncadd [#allocation2], 4294967264 }
  0xd0   :  { %535 = dma.done.wait [#allocation2 + $0x1], 32 }
  0xd1   :  { %536 = vsyncadd [#allocation2 + $0x1], 4294967264 }
  0xd2   :  { %537 = dma.done.wait [#allocation2 + $0x2], 32 }
  0xd3   :  { %538 = vsyncadd [#allocation2 + $0x2], 4294967264 }
  0xd4   :  { %539 = dma.done.wait [#allocation2 + $0x3], 32 }
  0xd5   :  { %540 = vsyncadd [#allocation2 + $0x3], 4294967264 }
  0xd6   :  { %541 = dma.done.wait [#allocation2 + $0x4], 32 }
  0xd7   :  { %542 = vsyncadd [#allocation2 + $0x4], 4294967264 }
  0xd8   :  { %543 = dma.done.wait [#allocation2 + $0x5], 32 }
  0xd9   :  { %544 = vsyncadd [#allocation2 + $0x5], 4294967264 }
  0xda   :  { %545 = dma.done.wait [#allocation2 + $0x6], 32 }
  0xdb   :  { %546 = vsyncadd [#allocation2 + $0x6], 4294967264 }
  0xdc   :  { %547 = dma.done.wait [#allocation2 + $0x7], 32 }
  0xdd   :  { %548 = vsyncadd [#allocation2 + $0x7], 4294967264 }
  0xde   :  { %182 = vsyncmov [#allocation2] }
  0xe1   :  { %s183_s3 = vpop.sfrf %182 }
  0xe2   :  { %p316_p3 = scmp.ne.s32.totalorder %s183_s3, 0 }
  0xe4   :  { %187 = shalt.err (%p316_p3)  }
  0xe5   :  { %189 = vsyncmov [#allocation2 + $0x1] }
  0xe8   :  { %s190_s19 = vpop.sfrf %189 }
  0xe9   :  { %p317_p4 = scmp.ne.s32.totalorder %s190_s19, 0 }
  0xeb   :  { %194 = shalt.err (%p317_p4)  }
  0xec   :  { %196 = vsyncmov [#allocation2 + $0x2] }
  0xef   :  { %s197_s14 = vpop.sfrf %196 }
  0xf0   :  { %p318_p5 = scmp.ne.s32.totalorder %s197_s14, 0 }
  0xf2   :  { %201 = shalt.err (%p318_p5)  }
  0xf3   :  { %203 = vsyncmov [#allocation2 + $0x3] }
  0xf6   :  { %s204_s17 = vpop.sfrf %203 }
  0xf7   :  { %p319_p6 = scmp.ne.s32.totalorder %s204_s17, 0 }
  0xf9   :  { %208 = shalt.err (%p319_p6)  }
  0xfa   :  { %210 = vsyncmov [#allocation2 + $0x4] }
  0xfd   :  { %s211_s20 = vpop.sfrf %210 }
  0xfe   :  { %p320_p7 = scmp.ne.s32.totalorder %s211_s20, 0 }
 0x100   :  { %215 = shalt.err (%p320_p7)  }
 0x101   :  { %217 = vsyncmov [#allocation2 + $0x5] }
 0x104   :  { %s218_s21 = vpop.sfrf %217 }
 0x105   :  { %p321_p8 = scmp.ne.s32.totalorder %s218_s21, 0 }
 0x107   :  { %222 = shalt.err (%p321_p8)  }
 0x108   :  { %224 = vsyncmov [#allocation2 + $0x6] }
 0x10b   :  { %s225_s8 = vpop.sfrf %224 }
 0x10c   :  { %p322_p9 = scmp.ne.s32.totalorder %s225_s8, 0 }
 0x10e   :  { %229 = shalt.err (%p322_p9)  }
 0x10f   :  { %231 = vsyncmov [#allocation2 + $0x7] }
 0x112   :  { %s232_s0 = vpop.sfrf %231 }
 0x113   :  { %p323_p10 = scmp.ne.s32.totalorder %s232_s0, 0 }
 0x115   :  { %236 = shalt.err (%p323_p10)  }

</bundles_post_ra>
